<compile_context>
chip_gen: v7x
topology: tpu7x:2x2x1
jax: 0.10.0
libtpu: 0.0.40
codegen_flags: <defaults>
</compile_context>

<pallas_src>
import jax
import jax.numpy as jnp
from jax import lax
from jax.experimental import pallas as pl
from jax.experimental.pallas import tpu as pltpu


def _round_up(x, m):
    return (x + m - 1) // m * m


def _discriminator_kernel(b_ref, v_ref, hpl_ref, hmi_ref, out_ref):
    # b_ref:   (1,)           SMEM  scalar bias
    # v_ref:   (1, n_h)       VMEM  v = W[0] @ c (precomputed, f32)
    # hpl_ref: (tile_n, n_h)  VMEM  streamed tile of h_pl (native dtype)
    # hmi_ref: (tile_n, n_h)  VMEM  streamed tile of h_mi (native dtype)
    # out_ref: (2, tile_n)    VMEM  row 0 = sc_1 tile, row 1 = sc_2 tile
    v = v_ref[...]                                 # (1, n_h) f32
    hpl = hpl_ref[...].astype(jnp.float32)         # in-vreg cast (no-op if f32)
    hmi = hmi_ref[...].astype(jnp.float32)
    dims = (((1,), (1,)), ((), ()))                # contract n_h with n_h
    sc1 = lax.dot_general(v, hpl, dims,
                          preferred_element_type=jnp.float32)   # (1, tile_n)
    sc2 = lax.dot_general(v, hmi, dims,
                          preferred_element_type=jnp.float32)   # (1, tile_n)
    b = b_ref[0]
    out_ref[0:1, :] = sc1 + b                      # lane-dense, unmasked stores
    out_ref[1:2, :] = sc2 + b


def discriminator_forward(c, h_pl, h_mi, weight, bias,
                          s_bias1=None, s_bias2=None, tile_n=512):
    """c: (n_h,), h_pl/h_mi: (N, n_h) any float dtype, weight: (1, n_h, n_h),
    bias: (1,).  Returns logits (2N,) f32, matching torch.cat((sc_1, sc_2))."""
    n, n_h = h_pl.shape
    assert h_mi.shape == (n, n_h)

    # Hoist the tiny matvec out of the kernel: v = W[0] @ c, shape (1, n_h).
    v = jnp.dot(weight[0].astype(jnp.float32),
                c.astype(jnp.float32)).reshape(1, n_h)
    b1d = bias.reshape(1).astype(jnp.float32)

    # Tile N; tile size is a multiple of 128 (satisfies both the sublane
    # constraint on the h blocks and the lane constraint on the (2, tile_n)
    # output block).  Pad N up to a multiple of the tile size with zeros
    # (padded scores are dropped below).
    tile_n = max(128, min(int(tile_n), _round_up(n, 128)))
    tile_n = _round_up(tile_n, 128)
    n_pad = _round_up(n, tile_n)
    if n_pad != n:
        pad = ((0, n_pad - n), (0, 0))
        h_pl = jnp.pad(h_pl, pad)
        h_mi = jnp.pad(h_mi, pad)
    grid = (n_pad // tile_n,)

    h_itemsize = jnp.dtype(h_pl.dtype).itemsize
    cost = pl.CostEstimate(
        flops=4 * n_pad * n_h,
        transcendentals=0,
        bytes_accessed=2 * n_pad * n_h * h_itemsize + 4 * (n_h + 2 * n_pad),
    )
    # 2 h streams x 2 pipeline buffers + v + out, with headroom; keep well
    # under v7x's 64 MiB physical VMEM.
    vmem_need = (2 * 2 * tile_n * n_h * h_itemsize
                 + 2 * 2 * tile_n * 4 + n_h * 4)
    vmem_limit = int(min(max(4 * vmem_need, 8 << 20), 48 << 20))

    out = pl.pallas_call(
        _discriminator_kernel,
        out_shape=jax.ShapeDtypeStruct((2, n_pad), jnp.float32),
        grid=grid,
        in_specs=[
            pl.BlockSpec(memory_space=pltpu.SMEM),           # bias (scalar)
            pl.BlockSpec((1, n_h), lambda i: (0, 0)),        # v (resident)
            pl.BlockSpec((tile_n, n_h), lambda i: (i, 0)),   # h_pl tile
            pl.BlockSpec((tile_n, n_h), lambda i: (i, 0)),   # h_mi tile
        ],
        out_specs=pl.BlockSpec((2, tile_n), lambda i: (0, i)),
        compiler_params=pltpu.CompilerParams(
            dimension_semantics=("parallel",),
            vmem_limit_bytes=vmem_limit,
        ),
        cost_estimate=cost,
    )(b1d, v, h_pl, h_mi)

    sc_1 = out[0, :n]
    sc_2 = out[1, :n]
    if s_bias1 is not None:
        sc_1 = sc_1 + s_bias1
    if s_bias2 is not None:
        sc_2 = sc_2 + s_bias2
    return jnp.concatenate([sc_1, sc_2])  # cat((sc_1, sc_2)) -> (2N,)


def xavier_uniform_bilinear(key, out_f, in1, in2, dtype=jnp.float32):
    # Matches torch.nn.init.xavier_uniform_ for a (out_f, in1, in2) tensor:
    # fan_in = in1 * in2, fan_out = out_f * in2.
    receptive = in2
    fan_in = in1 * receptive
    fan_out = out_f * receptive
    bound = jnp.sqrt(6.0 / (fan_in + fan_out))
    return jax.random.uniform(key, (out_f, in1, in2), dtype,
                              minval=-bound, maxval=bound)


if __name__ == "__main__":
    N = 200     # number of nodes (non-multiple of 128 to exercise padding)
    n_h = 32    # hidden dim

    key = jax.random.PRNGKey(0)
    k_w, k_c, k_pl, k_mi = jax.random.split(key, 4)

    weight = xavier_uniform_bilinear(k_w, 1, n_h, n_h)   # (1, n_h, n_h)
    bias = jnp.zeros((1,), jnp.float32)                  # filled with 0.0

    c = jax.random.normal(k_c, (n_h,), jnp.float32)
    h_pl = jax.random.normal(k_pl, (N, n_h), jnp.float32)
    h_mi = jax.random.normal(k_mi, (N, n_h), jnp.float32)

    # f32 path
    logits = discriminator_forward(c, h_pl, h_mi, weight, bias)
    logits = jax.block_until_ready(logits)

    v_ref = weight[0] @ c
    ref = jnp.concatenate([h_pl @ v_ref + bias[0], h_mi @ v_ref + bias[0]])
    assert logits.shape == (2 * N,)
    assert jnp.allclose(logits, ref, atol=1e-5, rtol=1e-5)

    # bf16 streaming path (h kept bf16 in HBM, f32 accumulation in-kernel)
    logits_bf16 = discriminator_forward(
        c, h_pl.astype(jnp.bfloat16), h_mi.astype(jnp.bfloat16), weight, bias)
    logits_bf16 = jax.block_until_ready(logits_bf16)
    ref_bf16 = jnp.concatenate([
        h_pl.astype(jnp.bfloat16).astype(jnp.float32) @ v_ref + bias[0],
        h_mi.astype(jnp.bfloat16).astype(jnp.float32) @ v_ref + bias[0],
    ])
    assert jnp.allclose(logits_bf16, ref_bf16, atol=2e-2, rtol=2e-2)

    print("KERNEL_OK")
</pallas_src>

<mosaic_0001>
module attributes {stable_mosaic.version = 11 : i64} {
  func.func @_discriminator_kernel(%arg0: i32, %arg1: memref<1xf32, #tpu.memory_space<smem>>, %arg2: memref<1x32xf32, #tpu.memory_space<vmem>>, %arg3: memref<256x32xf32, #tpu.memory_space<vmem>>, %arg4: memref<256x32xf32, #tpu.memory_space<vmem>>, %arg5: memref<2x256xf32, #tpu.memory_space<vmem>>) attributes {dimension_semantics = [#tpu.dimension_semantics<parallel>], iteration_bounds = array<i64: 1>, scalar_prefetch = 0 : i64, scratch_operands = 0 : i64, tpu.core_type = #tpu.core_type<tc>, window_params = [{transform_indices = @transform_0, window_bounds = array<i64: 1>}, {pipeline_mode = #tpu.pipeline_mode<synchronous>, transform_indices = @transform_1, window_bounds = array<i64: 1, 32>}, {transform_indices = @transform_2, window_bounds = array<i64: 256, 32>}, {transform_indices = @transform_3, window_bounds = array<i64: 256, 32>}, {transform_indices = @transform_4, window_bounds = array<i64: 2, 256>}]} {
    %c0 = arith.constant 0 : index
    %c0_0 = arith.constant 0 : index
    %0 = vector.load %arg2[%c0, %c0_0] : memref<1x32xf32, #tpu.memory_space<vmem>>, vector<1x32xf32>
    %c0_1 = arith.constant 0 : index
    %c0_2 = arith.constant 0 : index
    %1 = vector.load %arg3[%c0_1, %c0_2] : memref<256x32xf32, #tpu.memory_space<vmem>>, vector<256x32xf32>
    %c0_3 = arith.constant 0 : index
    %c0_4 = arith.constant 0 : index
    %2 = vector.load %arg4[%c0_3, %c0_4] : memref<256x32xf32, #tpu.memory_space<vmem>>, vector<256x32xf32>
    %cst = arith.constant dense<0.000000e+00> : vector<1x256xf32>
    %3 = tpu.matmul %0, %1, %cst {dimension_numbers = #tpu.dot_dimension_numbers<[1], [1], [0], [0], [0, 0, 1, 0], [], []>} : vector<1x32xf32>, vector<256x32xf32>, vector<1x256xf32> -> vector<1x256xf32>
    %cst_5 = arith.constant dense<0.000000e+00> : vector<1x256xf32>
    %4 = tpu.matmul %0, %2, %cst_5 {dimension_numbers = #tpu.dot_dimension_numbers<[1], [1], [0], [0], [0, 0, 1, 0], [], []>} : vector<1x32xf32>, vector<256x32xf32>, vector<1x256xf32> -> vector<1x256xf32>
    %c0_6 = arith.constant 0 : index
    %5 = memref.load %arg1[%c0_6] : memref<1xf32, #tpu.memory_space<smem>>
    %6 = vector.broadcast %5 : f32 to vector<1x256xf32>
    %7 = arith.addf %3, %6 : vector<1x256xf32>
    %c0_7 = arith.constant 0 : index
    %c0_8 = arith.constant 0 : index
    %8 = vector.load %arg5[%c0_7, %c0_8] : memref<2x256xf32, #tpu.memory_space<vmem>>, vector<1x256xf32>
    tpu.vector_store %arg5[%c0_7, %c0_8], %7 {strides = array<i32>} : memref<2x256xf32, #tpu.memory_space<vmem>>, vector<1x256xf32>,
    %9 = vector.broadcast %5 : f32 to vector<1x256xf32>
    %10 = arith.addf %4, %9 : vector<1x256xf32>
    %c1 = arith.constant 1 : index
    %c0_9 = arith.constant 0 : index
    %11 = vector.load %arg5[%c1, %c0_9] : memref<2x256xf32, #tpu.memory_space<vmem>>, vector<1x256xf32>
    tpu.vector_store %arg5[%c1, %c0_9], %10 {strides = array<i32>} : memref<2x256xf32, #tpu.memory_space<vmem>>, vector<1x256xf32>,
    return
  }
  func.func @transform_0(%arg0: i32) -> i32 {
    %c0_i32 = arith.constant 0 : i32
    %c0_i32_0 = arith.constant 0 : i32
    return %c0_i32 : i32
  }
  func.func @transform_1(%arg0: i32) -> (i32, i32) {
    %c0_i32 = arith.constant 0 : i32
    %c0_i32_0 = arith.constant 0 : i32
    %c0_i32_1 = arith.constant 0 : i32
    return %c0_i32, %c0_i32_0 : i32, i32
  }
  func.func @transform_2(%arg0: i32) -> (i32, i32) {
    %c0_i32 = arith.constant 0 : i32
    %c0_i32_0 = arith.constant 0 : i32
    return %arg0, %c0_i32 : i32, i32
  }
  func.func @transform_3(%arg0: i32) -> (i32, i32) {
    %c0_i32 = arith.constant 0 : i32
    %c0_i32_0 = arith.constant 0 : i32
    return %arg0, %c0_i32 : i32, i32
  }
  func.func @transform_4(%arg0: i32) -> (i32, i32) {
    %c0_i32 = arith.constant 0 : i32
    %c0_i32_0 = arith.constant 0 : i32
    return %c0_i32, %arg0 : i32, i32
  }
}

</mosaic_0001>

<bundles_post_ra>
// kernel: tpu_custom_call.1
= control target key start
LH: loop header
LB: loop body
LE: loop exit
PB: predicated region body
PF: predicated region fallthrough
CT: control target
= control target key end

     0   :  { %vm86_vm0 = vcmask 261120   ;;  %s1054_s0 = inlined_call_operand.<no memory space> [shape: f32[1], index: 0, kind: input, shape index: {}]   ;;  %s1055_s1 = inlined_call_operand.vmem [shape: f32[1,32], index: 1, kind: input, shape index: {}]   ;;  %s1056_s2 = inlined_call_operand.vmem [shape: f32[256,32], index: 2, kind: input, shape index: {}]   ;;  %s1057_s3 = inlined_call_operand.vmem [shape: f32[256,32], index: 3, kind: input, shape index: {}]   ;;  %s1058_s4 = inlined_call_operand.hbm [shape: f32[2,256], index: 4, kind: output, shape index: {}]  }
   0x1   :  { %v36_v0 = vld [vmem:[%s1056_s2 + $0x80] sm:$0xff]  ;;  %v37_v1 = vld [vmem:[%s1056_s2 + $0x88] sm:$0xff]  ;;  %vm775_vm1 = vmpackc.low %vm86_vm0, %vm86_vm0 }
   0x2   :  { %v68_v2 = vld [vmem:[%s1057_s3 + $0x80] sm:$0xff]  ;;  %v615_v3 = vpack.c.bf16 %v37_v1, %v36_v0  ;;  %v69_v5 = vld [vmem:[%s1057_s3 + $0x88] sm:$0xff]  ;;  %v38_v13 = vld [vmem:[%s1056_s2 + $0x90] sm:$0xff] }
   0x3   :  { %v20_v6 = vld [vmem:[%s1056_s2] sm:$0xff]  ;;  %v663_v7 = vpack.c.bf16 %v69_v5, %v68_v2  ;;  %v21_v8 = vld [vmem:[%s1056_s2 + $0x8] sm:$0xff]  ;;  %v39_v14 = vld [vmem:[%s1056_s2 + $0x98] sm:$0xff] }
   0x4   :  { %v52_v9 = vld [vmem:[%s1057_s3] sm:$0xff]  ;;  %v53_v10 = vld [vmem:[%s1057_s3 + $0x8] sm:$0xff]  ;;  %617 = vmatprep.subr.msk.bf16.mxu0 %vm775_vm1, %v615_v3  ;;  %v618_v11 = vpack.c.bf16 %v21_v8, %v20_v6  ;;  %v70_v15 = vld [vmem:[%s1057_s3 + $0x90] sm:$0xff]  ;;  %v621_v16 = vpack.c.bf16 %v39_v14, %v38_v13 }
   0x5   :  { %v666_v12 = vpack.c.bf16 %v53_v10, %v52_v9  ;;  %665 = vmatprep.subr.msk.bf16.mxu1 %vm775_vm1, %v663_v7  ;;  %v71_v17 = vld [vmem:[%s1057_s3 + $0x98] sm:$0xff]  ;;  %v22_v19 = vld [vmem:[%s1056_s2 + $0x10] sm:$0xff]  ;;  %v40_v23 = vld [vmem:[%s1056_s2 + $0xa0] sm:$0xff] }
   0x6   :  { %620 = vmatpush3.bf16.xpose.msk.msra.mxu0 %vm775_vm1, %v618_v11  ;;  %v669_v18 = vpack.c.bf16 %v71_v17, %v70_v15  ;;  %v23_v20 = vld [vmem:[%s1056_s2 + $0x18] sm:$0xff]  ;;  %v54_v21 = vld [vmem:[%s1057_s3 + $0x10] sm:$0xff]  ;;  %v41_v24 = vld [vmem:[%s1056_s2 + $0xa8] sm:$0xff] }
   0x7   :  { %668 = vmatpush3.bf16.xpose.msk.msra.mxu1 %vm775_vm1, %v666_v12  ;;  %623 = vmatprep.subr.msk.bf16.mxu0 %vm775_vm1, %v621_v16  ;;  %v55_v22 = vld [vmem:[%s1057_s3 + $0x18] sm:$0xff]  ;;  %v72_v25 = vld [vmem:[%s1057_s3 + $0xa0] sm:$0xff]  ;;  %v73_v26 = vld [vmem:[%s1057_s3 + $0xa8] sm:$0xff]  ;;  %v624_v27 = vpack.c.bf16 %v23_v20, %v22_v19  ;;  %v627_v29 = vpack.c.bf16 %v41_v24, %v40_v23 }
   0x8   :  { %671 = vmatprep.subr.msk.bf16.mxu1 %vm775_vm1, %v669_v18  ;;  %v672_v28 = vpack.c.bf16 %v55_v22, %v54_v21  ;;  %v675_v30 = vpack.c.bf16 %v73_v26, %v72_v25  ;;  %v24_v31 = vld [vmem:[%s1056_s2 + $0x20] sm:$0xff]  ;;  %v25_v32 = vld [vmem:[%s1056_s2 + $0x28] sm:$0xff]  ;;  %v42_v35 = vld [vmem:[%s1056_s2 + $0xb0] sm:$0xff] }
   0x9   :  { %v56_v33 = vld [vmem:[%s1057_s3 + $0x20] sm:$0xff]  ;;  %v57_v34 = vld [vmem:[%s1057_s3 + $0x28] sm:$0xff]  ;;  %v43_v36 = vld [vmem:[%s1056_s2 + $0xb8] sm:$0xff]  ;;  %v630_v39 = vpack.c.bf16 %v25_v32, %v24_v31 }
   0xa   :  { %v74_v37 = vld [vmem:[%s1057_s3 + $0xb0] sm:$0xff]  ;;  %v75_v38 = vld [vmem:[%s1057_s3 + $0xb8] sm:$0xff]  ;;  %v678_v40 = vpack.c.bf16 %v57_v34, %v56_v33  ;;  %v633_v41 = vpack.c.bf16 %v43_v36, %v42_v35  ;;  %v890_v46 = vld [vmem:[%s1055_s1] sm:$0x1] }
   0xb   :  { %v681_v42 = vpack.c.bf16 %v75_v38, %v74_v37  ;;  %v26_v43 = vld [vmem:[%s1056_s2 + $0x30] sm:$0xff]  ;;  %v27_v44 = vld [vmem:[%s1056_s2 + $0x38] sm:$0xff]  ;;  %v44_v48 = vld [vmem:[%s1056_s2 + $0xc0] sm:$0xff] }
   0xc   :  { %v58_v45 = vld [vmem:[%s1057_s3 + $0x30] sm:$0xff]  ;;  %v59_v47 = vld [vmem:[%s1057_s3 + $0x38] sm:$0xff] }
   0xe   :  { %626 = vmatpush3.bf16.xpose.msk.msra.mxu0 %vm775_vm1, %v624_v27 }
   0xf   :  { %674 = vmatpush3.bf16.xpose.msk.msra.mxu1 %vm775_vm1, %v672_v28  ;;  %629 = vmatprep.subr.msk.bf16.mxu0 %vm775_vm1, %v627_v29 }
  0x10   :  { %677 = vmatprep.subr.msk.bf16.mxu1 %vm775_vm1, %v675_v30 }
  0x16   :  { %632 = vmatpush3.bf16.xpose.msk.msra.mxu0 %vm775_vm1, %v630_v39 }
  0x17   :  { %680 = vmatpush3.bf16.xpose.msk.msra.mxu1 %vm775_vm1, %v678_v40  ;;  %635 = vmatprep.subr.msk.bf16.mxu0 %vm775_vm1, %v633_v41 }
  0x18   :  { %683 = vmatprep.subr.msk.bf16.mxu1 %vm775_vm1, %v681_v42 }
  0x19   :  { %10 = vsyncpa [#allocation4], 0  ;;  %v45_v49 = vld [vmem:[%s1056_s2 + $0xc8] sm:$0xff]  ;;  %v76_v50 = vld [vmem:[%s1057_s3 + $0xc0] sm:$0xff]  ;;  %579 = vmatprep.mubr.msk.f32.mxu0 %vm86_vm0, %v890_v46  ;;  %613 = vmatprep.mubr.msk.f32.mxu1 %vm86_vm0, %v890_v46  ;;  %v636_v52 = vpack.c.bf16 %v27_v44, %v26_v43  ;;  %v684_v53 = vpack.c.bf16 %v59_v47, %v58_v45  ;;  %v737_v35 = vmov 1966171168   ;;  %v263_v37 = vlaneseq }
  0x1a   :  { %v77_v51 = vld [vmem:[%s1057_s3 + $0xc8] sm:$0xff]  ;;  %v639_v54 = vpack.c.bf16 %v45_v49, %v44_v48  ;;  %v28_v56 = vld [vmem:[%s1056_s2 + $0x40] sm:$0xff]  ;;  %v46_v60 = vld [vmem:[%s1056_s2 + $0xd0] sm:$0xff]  ;;  %v261_v36 = vunpack.c.l.s4 %v737_v35  ;;  %v85_v38 = vstv %s1054_s0 }
  0x1b   :  { %v687_v55 = vpack.c.bf16 %v77_v51, %v76_v50  ;;  %v29_v57 = vld [vmem:[%s1056_s2 + $0x48] sm:$0xff]  ;;  %v60_v58 = vld [vmem:[%s1057_s3 + $0x40] sm:$0xff]  ;;  %v47_v61 = vld [vmem:[%s1056_s2 + $0xd8] sm:$0xff]  ;;  %v264_v40 = vshrl.u32 %v263_v37, 7  ;;  %vm277_vm2 = vcmp.lt.s32.totalorder %v263_v37, 256 }
  0x1c   :  { %v61_v59 = vld [vmem:[%s1057_s3 + $0x48] sm:$0xff]  ;;  %v78_v62 = vld [vmem:[%s1057_s3 + $0xd0] sm:$0xff]  ;;  %v79_v63 = vld [vmem:[%s1057_s3 + $0xd8] sm:$0xff]  ;;  %v642_v0 = vpack.c.bf16 %v29_v57, %v28_v56  ;;  %v645_v2 = vpack.c.bf16 %v47_v61, %v46_v60  ;;  %v262_v39 = vunpack.c.0.s8 %v261_v36 }
  0x1d   :  { %v690_v1 = vpack.c.bf16 %v61_v59, %v60_v58  ;;  %v693_v3 = vpack.c.bf16 %v79_v63, %v78_v62  ;;  %v30_v5 = vld [vmem:[%s1056_s2 + $0x50] sm:$0xff]  ;;  %v31_v6 = vld [vmem:[%s1056_s2 + $0x58] sm:$0xff]  ;;  %v48_v9 = vld [vmem:[%s1056_s2 + $0xe0] sm:$0xff] }
  0x1e   :  { %638 = vmatpush3.bf16.xpose.msk.msra.mxu0 %vm775_vm1, %v636_v52  ;;  %v62_v7 = vld [vmem:[%s1057_s3 + $0x50] sm:$0xff]  ;;  %v63_v8 = vld [vmem:[%s1057_s3 + $0x58] sm:$0xff]  ;;  %v49_v10 = vld [vmem:[%s1056_s2 + $0xe8] sm:$0xff]  ;;  %v648_v13 = vpack.c.bf16 %v31_v6, %v30_v5  ;;  %v265_v48 = vsub.s32 %v262_v39, %v264_v40 }
  0x1f   :  { %686 = vmatpush3.bf16.xpose.msk.msra.mxu1 %vm775_vm1, %v684_v53  ;;  %641 = vmatprep.subr.msk.bf16.mxu0 %vm775_vm1, %v639_v54  ;;  %v80_v11 = vld [vmem:[%s1057_s3 + $0xe0] sm:$0xff]  ;;  %v81_v12 = vld [vmem:[%s1057_s3 + $0xe8] sm:$0xff]  ;;  %v696_v14 = vpack.c.bf16 %v63_v8, %v62_v7  ;;  %v651_v15 = vpack.c.bf16 %v49_v10, %v48_v9  ;;  %v50_v21 = vld [vmem:[%s1056_s2 + $0xf0] sm:$0xff] }
  0x20   :  { %689 = vmatprep.subr.msk.bf16.mxu1 %vm775_vm1, %v687_v55  ;;  %v699_v16 = vpack.c.bf16 %v81_v12, %v80_v11  ;;  %v32_v17 = vld [vmem:[%s1056_s2 + $0x60] sm:$0xff]  ;;  %v33_v18 = vld [vmem:[%s1056_s2 + $0x68] sm:$0xff]  ;;  %v51_v22 = vld [vmem:[%s1056_s2 + $0xf8] sm:$0xff] }
  0x21   :  { %v64_v19 = vld [vmem:[%s1057_s3 + $0x60] sm:$0xff]  ;;  %v65_v20 = vld [vmem:[%s1057_s3 + $0x68] sm:$0xff]  ;;  %v82_v23 = vld [vmem:[%s1057_s3 + $0xf0] sm:$0xff]  ;;  %v654_v25 = vpack.c.bf16 %v33_v18, %v32_v17  ;;  %v657_v27 = vpack.c.bf16 %v51_v22, %v50_v21 }
  0x22   :  { %v83_v24 = vld [vmem:[%s1057_s3 + $0xf8] sm:$0xff]  ;;  %v702_v26 = vpack.c.bf16 %v65_v20, %v64_v19  ;;  %v34_v29 = vld [vmem:[%s1056_s2 + $0x70] sm:$0xff] }
  0x23   :  { %v705_v28 = vpack.c.bf16 %v83_v24, %v82_v23  ;;  %v35_v30 = vld [vmem:[%s1056_s2 + $0x78] sm:$0xff]  ;;  %v66_v31 = vld [vmem:[%s1057_s3 + $0x70] sm:$0xff] }
  0x24   :  { %v67_v32 = vld [vmem:[%s1057_s3 + $0x78] sm:$0xff]  ;;  %v660_v33 = vpack.c.bf16 %v35_v30, %v34_v29  ;;  %s738_s3 = smov [#allocation3]  }
  0x25   :  { %v708_v34 = vpack.c.bf16 %v67_v32, %v66_v31  ;;  %s473_s13 = sshll.u32 %s738_s3, 4  ;;  %s474_s13 = int_to_ptr.vmem [resolvable:$true] %s473_s13 }
  0x26   :  { %644 = vmatpush3.bf16.xpose.msk.msra.mxu0 %vm775_vm1, %v642_v0  ;;  %s713_s0 = scalar_lea.vmem %s474_s13, 64  ;;  %p718_p1 = scmp.lt.s32.totalorder %s474_s13, %s474_s13 }
  0x27   :  { %692 = vmatpush3.bf16.xpose.msk.msra.mxu1 %vm775_vm1, %v690_v1  ;;  %647 = vmatprep.subr.msk.bf16.mxu0 %vm775_vm1, %v645_v2  ;;  %p714_p0 = scmp.ne.s32.totalorder %s474_s13, %s713_s0  ;;  %p719_p2 = scmp.lt.s32.totalorder %s713_s0, %s713_s0 }
  0x28   :  { %695 = vmatprep.subr.msk.bf16.mxu1 %vm775_vm1, %v693_v3 }
  0x29   :  { %p720_p3 = por %p719_p2, %p718_p1 }
  0x2b   :  { %p721_p4 = pnand %p720_p3, %p714_p0 }
  0x2e   :  { %650 = vmatpush3.bf16.xpose.msk.msra.mxu0 %vm775_vm1, %v648_v13 }
  0x2f   :  { %698 = vmatpush3.bf16.xpose.msk.msra.mxu1 %vm775_vm1, %v696_v14  ;;  %653 = vmatprep.subr.msk.bf16.mxu0 %vm775_vm1, %v651_v15 }
  0x30   :  { %701 = vmatprep.subr.msk.bf16.mxu1 %vm775_vm1, %v699_v16 }
  0x36   :  { %656 = vmatpush3.bf16.xpose.msk.msra.mxu0 %vm775_vm1, %v654_v25 }
  0x37   :  { %704 = vmatpush3.bf16.xpose.msk.msra.mxu1 %vm775_vm1, %v702_v26  ;;  %659 = vmatprep.subr.msk.bf16.mxu0 %vm775_vm1, %v657_v27 }
  0x38   :  { %707 = vmatprep.subr.msk.bf16.mxu1 %vm775_vm1, %v705_v28 }
  0x3e   :  { %662 = vmatpush3.bf16.xpose.msk.msra.mxu0 %vm775_vm1, %v660_v33 }
  0x3f   :  { %710 = vmatpush3.bf16.xpose.msk.msra.mxu1 %vm775_vm1, %v708_v34 }
  0x45   :  { %580 = vmatmul.mubr.msk.f32.vlgmr.msra.gmra.mrb[0].mxu0 %vm86_vm0, %v890_v46 }
  0x46   :  { %614 = vmatmul.mubr.msk.f32.vlgmr.msra.gmra.mrb[0].mxu1 %vm86_vm0, %v890_v46 }
 0x118   :  { %v252_v41 = vpop.f32.mrb[0].mxu0 }
 0x119   :  { %v442_v42 = vpop.f32.mrb[0].mxu1  ;;  %v253_v43 = vadd.f32 %v252_v41, %v85_v38  ;;  %v254_v44 = vpop.f32.mrb[1].mxu0 }
 0x11a   :  { %v443_v4 = vadd.f32 %v442_v42, %v85_v38  ;;  %v444_v45 = vpop.f32.mrb[1].mxu1  ;;  %v255_v47 = vadd.f32 %v254_v44, %v85_v38 }
 0x11b   :  { %v445_v49 = vadd.f32 %v444_v45, %v85_v38 }
 0x11c   :  { %v259_v50 = vcombine.low %v253_v43, %v255_v47 }
 0x11d   :  { %v449_v46 = vcombine.low %v443_v4, %v445_v49 }
 0x11e   :  { %v266_v51 = vrot.slane %v259_v50, %v265_v48 }
 0x11f   :  { %v456_v52 = vrot.slane %v449_v46, %v265_v48 }
 0x120   :  { %v273_v53 = vrot.slane %v266_v51, %v265_v48 }
 0x121   :  { %v463_v54 = vrot.slane %v456_v52, %v265_v48 }
 0x122   :  { %279 = vst.msk [vmem:[#allocation3] ss:$2 sm:$0x3] %vm277_vm2, %v273_v53 }
 0x123   :  { %466 = vst.msk [vmem:[#allocation3 + $0x1] ss:$2 sm:$0x3] %vm277_vm2, %v463_v54 }
 0x124   :  { %724 = shalt.err (!%p721_p4)
}
 0x125   :  { %s725_s16 = scalar_lea.hbm %s1058_s4, 64 }
 0x126   :  { %p726_p5 = scmp.ne.s32.totalorder %s1058_s4, %s725_s16  ;;  %p729_p6 = scmp.lt.u32.totalorder %s725_s16, %s1058_s4 }
 0x128   :  { %p731_p7 = pnand %p729_p6, %p726_p5 }
 0x12a   :  { %734 = shalt.err (!%p731_p7)
}
 0x12b   :  { %476 = dma.vmem_to_hbm [thread:$0]  %s474_s13, 64, %s1058_s4, [#allocation4]  }
 0x12c   :  { %735 = dma.done.wait [#allocation4], 64  }
 0x12d   :  { %736 = vsyncadd [#allocation4], 4294967232 }
 0x12e   :  { %480 = vsyncpa [#allocation4], 1 }

</bundles_post_ra>
